<compile_context>
chip_gen: v6e
topology: v6e:2x2x1
jax: 0.10.0
libtpu: 0.0.40
codegen_flags: <defaults>
</compile_context>

<pallas_src>
import functools

import jax
import jax.numpy as jnp
from jax.experimental import pallas as pl
from jax.experimental.pallas import tpu as pltpu


def _round_up(x, m):
    return ((x + m - 1) // m) * m


def _generator_kernel(x_ref, w_ref, b_ref, o_ref, m_ref, l_ref, *, tile_v):
    # x_ref : (TR, D)      row tile of token features (input dtype -> MXU)
    # w_ref : (D, TV)      vocab tile of the pre-transposed weight
    # b_ref : (1, TV)      vocab tile of the bias (f32)
    # o_ref : (TR, V_pad)  resident output block (raw logits -> log-probs)
    # m_ref : (TR, 1) f32  running max     (scratch)
    # l_ref : (TR, 1) f32  running sum-exp (scratch, rescaled)
    j = pl.program_id(1)

    @pl.when(j == 0)
    def _init():
        m_ref[...] = jnp.full_like(m_ref, -jnp.inf)
        l_ref[...] = jnp.zeros_like(l_ref)

    # Linear for this vocab tile: MXU matmul with f32 accumulate.
    logits = jnp.dot(x_ref[...], w_ref[...], preferred_element_type=jnp.float32)
    logits = logits + b_ref[...]

    # Online (streaming) logsumexp update: l = l*exp(m_old - m_new) + sum(exp(...))
    m_old = m_ref[...]
    m_new = jnp.maximum(m_old, jnp.max(logits, axis=-1, keepdims=True))
    l_ref[...] = (l_ref[...] * jnp.exp(m_old - m_new)
                  + jnp.sum(jnp.exp(logits - m_new), axis=-1, keepdims=True))
    m_ref[...] = m_new

    # Stash raw logits into the lane-dense resident output block.
    start = pl.multiple_of(j * tile_v, 128)
    o_ref[:, pl.ds(start, tile_v)] = logits.astype(o_ref.dtype)

    # Last vocab tile: normalize the whole row block in place.
    @pl.when(j == pl.num_programs(1) - 1)
    def _finalize():
        lse = m_ref[...] + jnp.log(l_ref[...])
        o_ref[...] = (o_ref[...].astype(jnp.float32) - lse).astype(o_ref.dtype)


def _pick_tiles(rows, D, V, x_itemsize, w_itemsize, out_itemsize,
                vmem_limit_bytes):
    """VMEM-aware tile selection (caller overrides win)."""
    # Vocab tile: lane-dense, MXU-friendly, but no bigger than the padded vocab.
    tile_v = min(512, _round_up(V, 128))
    v_pad = _round_up(V, tile_v)

    budget = int(0.75 * vmem_limit_bytes)
    # Fixed per-kernel cost independent of tile_rows: double-buffered W + bias.
    fixed = 2 * D * tile_v * w_itemsize + 2 * tile_v * 4
    # Per-row cost: resident output block (count x2 to be safe for writeback
    # double-buffering across row tiles) + double-buffered x tile + scratch.
    per_row = 2 * v_pad * out_itemsize + 2 * D * x_itemsize + 8

    tile_rows = (budget - fixed) // max(per_row, 1)
    tile_rows = max(8, min(256, int(tile_rows)))
    tile_rows = (tile_rows // 8) * 8
    tile_rows = min(tile_rows, _round_up(rows, 8))
    return tile_rows, tile_v


def generator_fcos(x, weight, bias, *, tile_rows=None, tile_v=None,
                   out_dtype=jnp.float32, vmem_limit_bytes=48 * 1024 * 1024):
    """x: (B, S, D); weight: (V, D) torch-style; bias: (V,). Returns (B, S, V)."""
    B, S, D = x.shape
    V = weight.shape[0]
    rows = B * S

    auto_tr, auto_tv = _pick_tiles(
        rows, D, V,
        jnp.dtype(x.dtype).itemsize,
        jnp.dtype(weight.dtype).itemsize,
        jnp.dtype(out_dtype).itemsize,
        vmem_limit_bytes,
    )
    if tile_rows is None:
        tile_rows = auto_tr
    if tile_v is None:
        tile_v = auto_tv

    rows_pad = _round_up(rows, tile_rows)
    v_pad = _round_up(V, tile_v)

    x2 = x.reshape(rows, D)
    if rows_pad != rows:
        x2 = jnp.pad(x2, ((0, rows_pad - rows), (0, 0)))

    w_t = weight.T  # (D, V)
    b = bias
    if v_pad != V:
        w_t = jnp.pad(w_t, ((0, 0), (0, v_pad - V)))
        # Very negative bias on padded columns -> exp(pad - m) underflows to 0.
        b = jnp.pad(b, (0, v_pad - V), constant_values=-1e30)
    b2 = b.reshape(1, v_pad).astype(jnp.float32)   # bias cast hoisted out of kernel

    grid = (rows_pad // tile_rows, v_pad // tile_v)
    kernel = functools.partial(_generator_kernel, tile_v=tile_v)

    out = pl.pallas_call(
        kernel,
        out_shape=jax.ShapeDtypeStruct((rows_pad, v_pad), out_dtype),
        grid_spec=pltpu.PrefetchScalarGridSpec(
            num_scalar_prefetch=0,
            grid=grid,
            in_specs=[
                pl.BlockSpec((tile_rows, D), lambda i, j: (i, 0)),   # x row tile
                pl.BlockSpec((D, tile_v), lambda i, j: (0, j)),      # W vocab tile
                pl.BlockSpec((1, tile_v), lambda i, j: (0, j)),      # bias vocab tile
            ],
            # Output block resident across the vocab axis (index constant in j),
            # lane-dense (v_pad is a multiple of 128).
            out_specs=pl.BlockSpec((tile_rows, v_pad), lambda i, j: (i, 0)),
            scratch_shapes=[
                pltpu.VMEM((tile_rows, 1), jnp.float32),  # running max m
                pltpu.VMEM((tile_rows, 1), jnp.float32),  # running sum-exp l
            ],
        ),
        compiler_params=pltpu.CompilerParams(
            dimension_semantics=("parallel", "arbitrary"),
            vmem_limit_bytes=vmem_limit_bytes,
        ),
    )(x2, w_t, b2)

    return out[:rows, :V].reshape(B, S, V)


def _reference(x, weight, bias):
    logits = jnp.einsum("bsd,vd->bsv", x, weight) + bias
    return jax.nn.log_softmax(logits, axis=-1)


if __name__ == "__main__":
    key = jax.random.PRNGKey(0)

    # Small shapes consistent with the module: (B, Sc, Dc) -> (B, Sc, voc_size).
    B, S, D, V = 2, 8, 32, 16
    kx, kw, kb = jax.random.split(key, 3)
    x = jax.random.normal(kx, (B, S, D), dtype=jnp.float32)

    # Deterministic param init mimicking nn.Linear: U(-1/sqrt(D), 1/sqrt(D)).
    bound = 1.0 / (D ** 0.5)
    weight = jax.random.uniform(kw, (V, D), minval=-bound, maxval=bound,
                                dtype=jnp.float32)
    bias = jax.random.uniform(kb, (V,), minval=-bound, maxval=bound,
                              dtype=jnp.float32)

    out = generator_fcos(x, weight, bias)
    out = jax.block_until_ready(out)
    ref = _reference(x, weight, bias)
    assert out.shape == (B, S, V)
    assert jnp.allclose(out, ref, atol=2e-5, rtol=2e-5)

    # Second check: exercises row + vocab padding and the multi-tile streaming
    # logsumexp path (3 row tiles x 3 vocab tiles).
    B2, S2, D2, V2 = 2, 24, 64, 300
    k2x, k2w, k2b = jax.random.split(jax.random.PRNGKey(1), 3)
    x2 = jax.random.normal(k2x, (B2, S2, D2), dtype=jnp.float32)
    bound2 = 1.0 / (D2 ** 0.5)
    w2 = jax.random.uniform(k2w, (V2, D2), minval=-bound2, maxval=bound2,
                            dtype=jnp.float32)
    bi2 = jax.random.uniform(k2b, (V2,), minval=-bound2, maxval=bound2,
                             dtype=jnp.float32)
    out2 = generator_fcos(x2, w2, bi2, tile_rows=16, tile_v=128)
    out2 = jax.block_until_ready(out2)
    ref2 = _reference(x2, w2, bi2)
    assert out2.shape == (B2, S2, V2)
    assert jnp.allclose(out2, ref2, atol=2e-5, rtol=2e-5)

    # Third check: auto-picked tiles on a bf16 activation / f32 output mix.
    B3, S3, D3, V3 = 2, 40, 128, 1000
    k3x, k3w, k3b = jax.random.split(jax.random.PRNGKey(2), 3)
    x3 = jax.random.normal(k3x, (B3, S3, D3), dtype=jnp.float32)
    bound3 = 1.0 / (D3 ** 0.5)
    w3 = jax.random.uniform(k3w, (V3, D3), minval=-bound3, maxval=bound3,
                            dtype=jnp.float32)
    bi3 = jax.random.uniform(k3b, (V3,), minval=-bound3, maxval=bound3,
                             dtype=jnp.float32)
    out3 = generator_fcos(x3, w3, bi3)
    out3 = jax.block_until_ready(out3)
    ref3 = _reference(x3, w3, bi3)
    assert out3.shape == (B3, S3, V3)
    assert jnp.allclose(out3, ref3, atol=2e-5, rtol=2e-5)

    print("KERNEL_OK")
</pallas_src>

<mosaic_0001>
module attributes {stable_mosaic.version = 11 : i64} {
  func.func @_generator_kernel(%arg0: i32, %arg1: i32, %arg2: memref<16x32xf32, #tpu.memory_space<vmem>>, %arg3: memref<32x128xf32, #tpu.memory_space<vmem>>, %arg4: memref<1x128xf32, #tpu.memory_space<vmem>>, %arg5: memref<16x128xf32, #tpu.memory_space<vmem>>, %arg6: memref<16x1xf32, #tpu.memory_space<vmem>>, %arg7: memref<16x1xf32, #tpu.memory_space<vmem>>) attributes {dimension_semantics = [#tpu.dimension_semantics<parallel>, #tpu.dimension_semantics<arbitrary>], iteration_bounds = array<i64: 1, 1>, scalar_prefetch = 0 : i64, scratch_operands = 2 : i64, tpu.core_type = #tpu.core_type<tc>, window_params = [{transform_indices = @transform_0, window_bounds = array<i64: 16, 32>}, {transform_indices = @transform_1, window_bounds = array<i64: 32, 128>}, {transform_indices = @transform_2, window_bounds = array<i64: 1, 128>}, {transform_indices = @transform_3, window_bounds = array<i64: 16, 128>}]} {
    %c0_i32 = arith.constant 0 : i32
    %0 = arith.cmpi eq, %arg1, %c0_i32 : i32
    %1 = arith.extui %0 : i1 to i32
    %c0_i32_0 = arith.constant 0 : i32
    %2 = arith.cmpi ne, %1, %c0_i32_0 : i32
    scf.if %2 {
      %cst_19 = arith.constant 0xFF800000 : f32
      %32 = vector.broadcast %cst_19 : f32 to vector<16x1xf32>
      %c0_20 = arith.constant 0 : index
      %c0_21 = arith.constant 0 : index
      %33 = vector.load %arg6[%c0_20, %c0_21] : memref<16x1xf32, #tpu.memory_space<vmem>>, vector<16x1xf32>
      tpu.vector_store %arg6[%c0_20, %c0_21], %32 {strides = array<i32>} : memref<16x1xf32, #tpu.memory_space<vmem>>, vector<16x1xf32>,
      %cst_22 = arith.constant 0.000000e+00 : f32
      %34 = vector.broadcast %cst_22 : f32 to vector<16x1xf32>
      %c0_23 = arith.constant 0 : index
      %c0_24 = arith.constant 0 : index
      %35 = vector.load %arg7[%c0_23, %c0_24] : memref<16x1xf32, #tpu.memory_space<vmem>>, vector<16x1xf32>
      tpu.vector_store %arg7[%c0_23, %c0_24], %34 {strides = array<i32>} : memref<16x1xf32, #tpu.memory_space<vmem>>, vector<16x1xf32>,
    } else {
    }
    %c0 = arith.constant 0 : index
    %c0_1 = arith.constant 0 : index
    %3 = vector.load %arg2[%c0, %c0_1] : memref<16x32xf32, #tpu.memory_space<vmem>>, vector<16x32xf32>
    %c0_2 = arith.constant 0 : index
    %c0_3 = arith.constant 0 : index
    %4 = vector.load %arg3[%c0_2, %c0_3] : memref<32x128xf32, #tpu.memory_space<vmem>>, vector<32x128xf32>
    %cst = arith.constant dense<0.000000e+00> : vector<16x128xf32>
    %5 = tpu.matmul %3, %4, %cst {dimension_numbers = #tpu.dot_dimension_numbers<[1], [0], [0], [1], [0, 0, 1, 1], [], []>} : vector<16x32xf32>, vector<32x128xf32>, vector<16x128xf32> -> vector<16x128xf32>
    %c0_4 = arith.constant 0 : index
    %c0_5 = arith.constant 0 : index
    %6 = vector.load %arg4[%c0_4, %c0_5] : memref<1x128xf32, #tpu.memory_space<vmem>>, vector<1x128xf32>
    %7 = vector.broadcast %6 : vector<1x128xf32> to vector<16x128xf32>
    %8 = arith.addf %5, %7 : vector<16x128xf32>
    %c0_6 = arith.constant 0 : index
    %c0_7 = arith.constant 0 : index
    %9 = vector.load %arg6[%c0_6, %c0_7] : memref<16x1xf32, #tpu.memory_space<vmem>>, vector<16x1xf32>
    %cst_8 = arith.constant dense<0xFF800000> : vector<16xf32>
    %10 = vector.multi_reduction <maximumf>, %8, %cst_8 [1] : vector<16x128xf32> to vector<16xf32>
    %11 = vector.shape_cast %10 : vector<16xf32> to vector<16x1xf32>
    %12 = arith.maximumf %9, %11 : vector<16x1xf32>
    %c0_9 = arith.constant 0 : index
    %c0_10 = arith.constant 0 : index
    %13 = vector.load %arg7[%c0_9, %c0_10] : memref<16x1xf32, #tpu.memory_space<vmem>>, vector<16x1xf32>
    %14 = arith.subf %9, %12 : vector<16x1xf32>
    %15 = math.exp %14 : vector<16x1xf32>
    %16 = arith.mulf %13, %15 : vector<16x1xf32>
    %17 = vector.broadcast %12 : vector<16x1xf32> to vector<16x128xf32>
    %18 = arith.subf %8, %17 : vector<16x128xf32>
    %19 = math.exp %18 : vector<16x128xf32>
    %cst_11 = arith.constant dense<0.000000e+00> : vector<16xf32>
    %20 = vector.multi_reduction <add>, %19, %cst_11 [1] : vector<16x128xf32> to vector<16xf32>
    %21 = vector.shape_cast %20 : vector<16xf32> to vector<16x1xf32>
    %22 = arith.addf %16, %21 : vector<16x1xf32>
    %c0_12 = arith.constant 0 : index
    %c0_13 = arith.constant 0 : index
    %23 = vector.load %arg7[%c0_12, %c0_13] : memref<16x1xf32, #tpu.memory_space<vmem>>, vector<16x1xf32>
    tpu.vector_store %arg7[%c0_12, %c0_13], %22 {strides = array<i32>} : memref<16x1xf32, #tpu.memory_space<vmem>>, vector<16x1xf32>,
    %c0_14 = arith.constant 0 : index
    %c0_15 = arith.constant 0 : index
    %24 = vector.load %arg6[%c0_14, %c0_15] : memref<16x1xf32, #tpu.memory_space<vmem>>, vector<16x1xf32>
    tpu.vector_store %arg6[%c0_14, %c0_15], %12 {strides = array<i32>} : memref<16x1xf32, #tpu.memory_space<vmem>>, vector<16x1xf32>,
    %c128_i32 = arith.constant 128 : i32
    %25 = arith.muli %arg1, %c128_i32 : i32
    %26 = tpu.assume_multiple %25, 128 : i32
    %c0_16 = arith.constant 0 : index
    %27 = arith.index_cast %26 : i32 to index
    %28 = vector.load %arg5[%c0_16, %27] : memref<16x128xf32, #tpu.memory_space<vmem>>, vector<16x128xf32>
    tpu.vector_store %arg5[%c0_16, %27], %8 {strides = array<i32>} : memref<16x128xf32, #tpu.memory_space<vmem>>, vector<16x128xf32>,
    %c0_i32_17 = arith.constant 0 : i32
    %29 = arith.cmpi eq, %arg1, %c0_i32_17 : i32
    %30 = arith.extui %29 : i1 to i32
    %c0_i32_18 = arith.constant 0 : i32
    %31 = arith.cmpi ne, %30, %c0_i32_18 : i32
    scf.if %31 {
      %c0_19 = arith.constant 0 : index
      %c0_20 = arith.constant 0 : index
      %32 = vector.load %arg6[%c0_19, %c0_20] : memref<16x1xf32, #tpu.memory_space<vmem>>, vector<16x1xf32>
      %c0_21 = arith.constant 0 : index
      %c0_22 = arith.constant 0 : index
      %33 = vector.load %arg7[%c0_21, %c0_22] : memref<16x1xf32, #tpu.memory_space<vmem>>, vector<16x1xf32>
      %34 = math.log %33 : vector<16x1xf32>
      %35 = arith.addf %32, %34 : vector<16x1xf32>
      %c0_23 = arith.constant 0 : index
      %c0_24 = arith.constant 0 : index
      %36 = vector.load %arg5[%c0_23, %c0_24] : memref<16x128xf32, #tpu.memory_space<vmem>>, vector<16x128xf32>
      %37 = vector.broadcast %35 : vector<16x1xf32> to vector<16x128xf32>
      %38 = arith.subf %36, %37 : vector<16x128xf32>
      %c0_25 = arith.constant 0 : index
      %c0_26 = arith.constant 0 : index
      %39 = vector.load %arg5[%c0_25, %c0_26] : memref<16x128xf32, #tpu.memory_space<vmem>>, vector<16x128xf32>
      tpu.vector_store %arg5[%c0_25, %c0_26], %38 {strides = array<i32>} : memref<16x128xf32, #tpu.memory_space<vmem>>, vector<16x128xf32>,
    } else {
    }
    return
  }
  func.func @transform_0(%arg0: i32, %arg1: i32) -> (i32, i32) {
    %c0_i32 = arith.constant 0 : i32
    %c0_i32_0 = arith.constant 0 : i32
    return %arg0, %c0_i32 : i32, i32
  }
  func.func @transform_1(%arg0: i32, %arg1: i32) -> (i32, i32) {
    %c0_i32 = arith.constant 0 : i32
    %c0_i32_0 = arith.constant 0 : i32
    return %c0_i32, %arg1 : i32, i32
  }
  func.func @transform_2(%arg0: i32, %arg1: i32) -> (i32, i32) {
    %c0_i32 = arith.constant 0 : i32
    %c0_i32_0 = arith.constant 0 : i32
    return %c0_i32, %arg1 : i32, i32
  }
  func.func @transform_3(%arg0: i32, %arg1: i32) -> (i32, i32) {
    %c0_i32 = arith.constant 0 : i32
    %c0_i32_0 = arith.constant 0 : i32
    return %arg0, %c0_i32 : i32, i32
  }
}

</mosaic_0001>

<bundles_post_ra>
// kernel: tpu_custom_call.1
= control target key start
LH: loop header
LB: loop body
LE: loop exit
PB: predicated region body
PF: predicated region fallthrough
CT: control target
= control target key end

     0   :  { %8 = vsyncpa [#allocation5], 0  ;;  %s423_s0 = inlined_call_operand.hbm [shape: f32[16,32], index: 0, kind: input, shape index: {}]   ;;  %s424_s1 = inlined_call_operand.hbm [shape: f32[32,128], index: 1, kind: input, shape index: {}]   ;;  %s425_s2 = inlined_call_operand.vmem [shape: f32[1,128], index: 2, kind: input, shape index: {}]   ;;  %s426_s3 = inlined_call_operand.hbm [shape: f32[16,128], index: 3, kind: output, shape index: {}]  }
   0x1   :  { %9 = vsyncpa [#allocation8], 0 }
   0x2   :  { %10 = vsyncpa [#allocation6], 0  ;;  %s354_s12 = smov [#allocation4]  }
   0x3   :  { %s16_s13 = sshll.u32 %s354_s12, 4  ;;  %s17_s13 = int_to_ptr.vmem [resolvable:$true] %s16_s13 }
   0x4   :  { %s296_s14 = scalar_lea.vmem %s17_s13, 256  ;;  %p301_p1 = scmp.lt.s32.totalorder %s17_s13, %s17_s13 }
   0x5   :  { %p297_p0 = scmp.ne.s32.totalorder %s17_s13, %s296_s14  ;;  %p302_p2 = scmp.lt.s32.totalorder %s296_s14, %s296_s14 }
   0x7   :  { %p303_p3 = por %p302_p2, %p301_p1 }
   0x9   :  { %p304_p4 = pnand %p303_p3, %p297_p0 }
   0xb   :  { %307 = shalt.err (!%p304_p4)
}
   0xc   :  { %s355_s15 = smov 128   ;;  %s356_s16 = smov 8  }
   0xd   :  { %22 = dma.hbm_to_vmem [thread:$0]  %s423_s0, 256, %s17_s13, [#allocation5], %s355_s15, %s355_s15, %s356_s16  }
   0xe   :  { %s357_s19 = smov [#allocation7]  }
   0xf   :  { %s28_s20 = sshll.u32 %s357_s19, 4  ;;  %s29_s20 = int_to_ptr.vmem [resolvable:$true] %s28_s20 }
  0x10   :  { %s316_s21 = scalar_lea.vmem %s29_s20, 512  ;;  %p321_p6 = scmp.lt.s32.totalorder %s29_s20, %s29_s20 }
  0x11   :  { %p317_p5 = scmp.ne.s32.totalorder %s29_s20, %s316_s21  ;;  %p322_p7 = scmp.lt.s32.totalorder %s316_s21, %s316_s21 }
  0x13   :  { %p323_p8 = por %p322_p7, %p321_p6 }
  0x15   :  { %p324_p9 = pnand %p323_p8, %p317_p5 }
  0x17   :  { %327 = shalt.err (!%p324_p9)
}
  0x18   :  { %34 = dma.hbm_to_vmem [thread:$0]  %s424_s1, 512, %s29_s20, [#allocation8], %s355_s15, %s355_s15, %s356_s16  }
  0x19   :  { %348 = dma.done.wait [#allocation5], 256  }
  0x1a   :  { %349 = vsyncadd [#allocation5], 4294967040 }
  0x1b   :  { %350 = dma.done.wait [#allocation8], 512  }
  0x1c   :  { %351 = vsyncadd [#allocation8], 4294966784  ;;  %vm65_vm0 = vcmask 261120   ;;  %v57_v0 = vld [vmem:[#allocation7 + $0x18] sm:$0xff]  ;;  %v56_v1 = vld [vmem:[#allocation7 + $0x10] sm:$0xff]  ;;  %vm47_vm1 = vcmask 7168  }
  0x1d   :  { %255 = vmatprep.subr.mxu0 %v57_v0  ;;  %v52_v2 = vld [vmem:[#allocation4] sm:$0xff]  ;;  %v55_v3 = vld [vmem:[#allocation7 + $0x8] sm:$0xff]  ;;  %v54_v4 = vld [vmem:[#allocation7] sm:$0xff]  ;;  %v358_v6 = vmov -inf   ;;  %v359_v12 = vmov 0   ;;  %v360_v13 = vmov 0.0  }
  0x1e   :  { %256 = vmatpush3.msra.mxu0 %v57_v0  ;;  %263 = vmatprep.mubr.msk.f32.mxu0 %vm65_vm0, %v52_v2  ;;  %v53_v5 = vld [vmem:[#allocation4 + $0x8] sm:$0xff]  ;;  %48 = vst.msk [vmem:[#allocation2] sm:$0xff] %vm47_vm1, %v358_v6  ;;  %49 = vst.msk [vmem:[#allocation2 + $0x8] sm:$0xff] %vm47_vm1, %v358_v6  ;;  %v246_v8 = vld [vmem:[%s425_s2] ss:$0 sm:$0xff]  ;;  %s361_s2 = smov [#allocation9]  }
  0x1f   :  { %257 = vmatprep.subr.mxu0 %v56_v1  ;;  %274 = vset.pattern.permute.xlu1 %v359_v12  ;;  %50 = vst.msk [vmem:[#allocation3] sm:$0xff] %vm47_vm1, %v360_v13  ;;  %51 = vst.msk [vmem:[#allocation3 + $0x8] sm:$0xff] %vm47_vm1, %v360_v13  ;;  %s232_s24 = sshll.u32 %s361_s2, 4  ;;  %s233_s24 = int_to_ptr.vmem [resolvable:$true] %s232_s24 }
  0x20   :  { %258 = vmatpush3.msra.mxu0 %v56_v1  ;;  %275 = vset.pattern.permute.xlu0 %v359_v12  ;;  %s328_s25 = scalar_lea.vmem %s233_s24, 256  ;;  %p333_p11 = scmp.lt.s32.totalorder %s233_s24, %s233_s24 }
  0x21   :  { %259 = vmatprep.subr.mxu0 %v55_v3  ;;  %p329_p10 = scmp.ne.s32.totalorder %s233_s24, %s328_s25  ;;  %p334_p12 = scmp.lt.s32.totalorder %s328_s25, %s328_s25 }
  0x22   :  { %260 = vmatpush3.msra.mxu0 %v55_v3 }
  0x23   :  { %261 = vmatprep.subr.mxu0 %v54_v4  ;;  %p335_p13 = por %p334_p12, %p333_p11 }
  0x24   :  { %262 = vmatpush3.msra.mxu0 %v54_v4 }
  0x25   :  { %264 = vmatmul.mubr.msk.f32.vlgmr.msra.gmra.mxu0 %vm65_vm0, %v53_v5  ;;  %v147_v14 = vld [vmem:[#allocation2] sm:$0xff]  ;;  %v148_v17 = vld [vmem:[#allocation2 + $0x8] sm:$0xff]  ;;  %p336_p0 = pnand %p335_p13, %p329_p10 }
  0x26   :  { %v155_v33 = vld [vmem:[#allocation3] sm:$0xff]  ;;  %v156_v37 = vld [vmem:[#allocation3 + $0x8] sm:$0xff] }
  0xe5   :  { %v265_v7 = vpop.f32.mrf.mxu0 }
  0xe6   :  { %v404_v11 = vadd.f32 %v265_v7, %v246_v8 }
  0xe7   :  { %v138_v9 = vpop.f32.mrf.mxu0 }
  0xe8   :  { %v401_v10 = vadd.f32 %v246_v8, %v138_v9 }
  0xea   :  { %149 = vmax.xlane.f32.xlu0 %v401_v10 }
  0xee   :  { %151 = vmax.xlane.f32.xlu0 %v404_v11 }
 0x173   :  { %v150_v15 = vpop.xlane.xlu0 %149 }
 0x174   :  { %v153_v16 = vmax.f32 %v147_v14, %v150_v15 }
 0x176   :  { %v157_v18 = vsub.f32 %v147_v14, %v153_v16  ;;  %190 = vst.msk [vmem:[#allocation2] sm:$0xff] %vm47_vm1, %v153_v16  ;;  %167 = vperm.xlu1 %274, %v153_v16  }
 0x177   :  { %v152_v19 = vpop.xlane.xlu0 %151 }
 0x178   :  { %v154_v20 = vmax.f32 %v148_v17, %v152_v19  ;;  %v159_v30 = vmul.f32 1.442695, %v157_v18 }
 0x17a   :  { %v158_v21 = vsub.f32 %v148_v17, %v154_v20  ;;  %191 = vst.msk [vmem:[#allocation2 + $0x8] sm:$0xff] %vm47_vm1, %v154_v20  ;;  %172 = vperm.xlu1 %274, %v154_v20  }
 0x17c   :  { %v161_v31 = vmul.f32 1.442695, %v158_v21 }
 0x17d   :  { %v201_v46 = vld [vmem:[#allocation2] sm:$0xff] }
 0x181   :  { %v202_v50 = vld [vmem:[#allocation2 + $0x8] sm:$0xff] }
 0x1f1   :  { %v168_v22 = vpop.permute.xlu1 %167 }
 0x1f2   :  { %v175_v23 = vsub.f32 %v401_v10, %v168_v22 }
 0x1f4   :  { %v177_v24 = vmul.f32 1.442695, %v175_v23 }
 0x1f5   :  { %v173_v25 = vpop.permute.xlu1 %172 }
 0x1f6   :  { %276 = vpow2.f32 %v177_v24  ;;  %v176_v26 = vsub.f32 %v404_v11, %v173_v25 }
 0x1f8   :  { %v179_v27 = vmul.f32 1.442695, %v176_v26 }
 0x1fa   :  { %278 = vpow2.f32 %v179_v27 }
 0x1fb   :  { %280 = vpow2.f32 %v159_v30 }
 0x1fc   :  { %282 = vpow2.f32 %v161_v31 }
 0x203   :  { %v277_v28 = vpop.eup %276 }
 0x204   :  { %181 = vadd.xlane.f32.xlu0 %v277_v28 }
 0x207   :  { %v279_v29 = vpop.eup %278 }
 0x208   :  { %183 = vadd.xlane.f32.xlu1 %v279_v29  ;;  %v281_v32 = vpop.eup %280 }
 0x209   :  { %v163_v34 = vmul.f32 %v281_v32, %v155_v33  ;;  %v283_v35 = vpop.eup %282 }
 0x20a   :  { %v164_v39 = vmul.f32 %v283_v35, %v156_v37 }
 0x28d   :  { %v182_v36 = vpop.xlane.xlu0 %181 }
 0x28e   :  { %v185_v38 = vadd.f32 %v182_v36, %v163_v34 }
 0x290   :  { %188 = vst.msk [vmem:[#allocation3] sm:$0xff] %vm47_vm1, %v185_v38 }
 0x291   :  { %v184_v40 = vpop.xlane.xlu1 %183 }
 0x292   :  { %v186_v41 = vadd.f32 %v184_v40, %v164_v39 }
 0x294   :  { %189 = vst.msk [vmem:[#allocation3 + $0x8] sm:$0xff] %vm47_vm1, %v186_v41 }
 0x297   :  { %v203_v42 = vld [vmem:[#allocation3] sm:$0xff] }
 0x298   :  { %284 = vlog2.f32 %v203_v42 }
 0x29b   :  { %v204_v43 = vld [vmem:[#allocation3 + $0x8] sm:$0xff] }
 0x29c   :  { %286 = vlog2.f32 %v204_v43 }
 0x2a5   :  { %v285_v44 = vpop.eup %284 }
 0x2a6   :  { %v206_v45 = vmul.f32 0.6931472, %v285_v44 }
 0x2a8   :  { %v209_v47 = vadd.f32 %v206_v45, %v201_v46 }
 0x2a9   :  { %v287_v48 = vpop.eup %286 }
 0x2aa   :  { %215 = vperm.xlu0 %275, %v209_v47   ;;  %v208_v49 = vmul.f32 0.6931472, %v287_v48 }
 0x2ac   :  { %v210_v51 = vadd.f32 %v208_v49, %v202_v50 }
 0x2ae   :  { %220 = vperm.xlu1 %274, %v210_v51  }
 0x325   :  { %v216_v52 = vpop.permute.xlu0 %215 }
 0x326   :  { %v223_v53 = vsub.f32 %v401_v10, %v216_v52 }
 0x328   :  { %225 = vst [vmem:[#allocation9] sm:$0xff] %v223_v53 }
 0x329   :  { %v221_v54 = vpop.permute.xlu1 %220 }
 0x32a   :  { %v224_v55 = vsub.f32 %v404_v11, %v221_v54 }
 0x32c   :  { %226 = vst [vmem:[#allocation9 + $0x8] sm:$0xff] %v224_v55 }
 0x32d   :  { %339 = shalt.err (!%p336_p0)
}
 0x32e   :  { %238 = dma.vmem_to_hbm [thread:$0]  %s233_s24, 256, %s426_s3, [#allocation6], %s355_s15, %s355_s15, %s356_s16  }
 0x32f   :  { %352 = dma.done.wait [#allocation6], 256  }
 0x330   :  { %353 = vsyncadd [#allocation6], 4294967040 }
 0x331   :  { %242 = vsyncpa [#allocation5], 1 }
 0x332   :  { %243 = vsyncpa [#allocation8], 1 }
 0x333   :  { %244 = vsyncpa [#allocation6], 1 }

</bundles_post_ra>
